<compile_context>
chip_gen: v7x
topology: tpu7x:2x2x1
jax: 0.10.0
libtpu: 0.0.40
codegen_flags: <defaults>
</compile_context>

<pallas_src>
import numpy as np
import jax
import jax.numpy as jnp
from jax.experimental import pallas as pl
from jax.experimental.pallas import tpu as pltpu


def fc_spatial_kernel(x_ref, wt_ref, b_ref, out_ref):
    """out[b, :, n] = W @ x[b, :, n] + bias, fused transposes, one matmul per block."""
    bt, d, n = x_ref.shape
    xb = x_ref[...]                                              # [Bt, D, N]
    # 'b d n -> (b n) d'  (minor-dims transpose; leading-dim merge is layout-cheap)
    xt = jnp.transpose(xb, (0, 2, 1)).reshape(bt * n, d)         # [Bt*N, D]
    # Linear over the channel axis: single MXU matmul for the whole block.
    y = jnp.dot(xt, wt_ref[...], preferred_element_type=jnp.float32)  # [Bt*N, D]
    y = y + b_ref[...]                                           # + [1, D]
    # '(b n) d -> b d n'
    y = jnp.transpose(y.reshape(bt, n, d), (0, 2, 1))            # [Bt, D, N]
    out_ref[...] = y.astype(out_ref.dtype)


def _choose_block_batch(B, D, N, itemsize):
    """Pick how many batch elements to process per grid step."""
    per_batch_bytes = D * N * itemsize
    # Keep a single input/output block around <= 4 MiB each; with double buffering
    # (2 in + 2 out) this stays far below v7x's 32 MiB default scoped VMEM.
    bt = max(1, (4 * 1024 * 1024) // max(1, per_batch_bytes))
    bt = min(bt, B)
    # Keep at least 2 grid steps when the batch allows it (v7x: 2 TensorCores share
    # the "parallel" grid axis; a single step would leave one core idle).
    if B >= 2 and bt >= B:
        bt = max(1, B // 2)
    return bt


def fc_spatial_forward(x, w, b, *, block_batch=None):
    """Pallas forward for FCSpatial.

    x: [B, D, N]  (channel-first, as in the PyTorch module)
    w: [D, D]     (nn.Linear weight, [out_features, in_features])
    b: [D]        (nn.Linear bias)
    returns [B, D, N]
    """
    B, D, N = x.shape
    assert w.shape == (D, D), w.shape
    assert b.shape == (D,), b.shape

    bt = block_batch if block_batch is not None else _choose_block_batch(
        B, D, N, x.dtype.itemsize)
    grid = (pl.cdiv(B, bt),)
    # Note: if B % bt != 0, the tail block is padded by Pallas; each batch element is
    # independent, so garbage in the padding only produces out-of-bounds rows whose
    # writes are discarded.

    w_t = jnp.asarray(w).T                   # [D_in, D_out], pre-transposed once in the wrapper
    b2d = jnp.asarray(b).reshape(1, D)       # [1, D] for broadcast over the flattened rows

    return pl.pallas_call(
        fc_spatial_kernel,
        out_shape=jax.ShapeDtypeStruct((B, D, N), x.dtype),
        grid=grid,
        in_specs=[
            pl.BlockSpec((bt, D, N), lambda i: (i, 0, 0)),   # x: tile only the batch axis
            pl.BlockSpec((D, D), lambda i: (0, 0)),          # W^T (resident)
            pl.BlockSpec((1, D), lambda i: (0, 0)),          # bias (resident)
        ],
        out_specs=pl.BlockSpec((bt, D, N), lambda i: (i, 0, 0)),
        compiler_params=pltpu.CompilerParams(
            dimension_semantics=("parallel",)),
    )(x, w_t, b2d)


def reference_forward(x, w, b):
    """Pure-JAX reference mirroring FCSpatial.forward (rearrange -> Linear -> rearrange)."""
    xt = jnp.swapaxes(x, 1, 2)               # 'b d n -> b n d'
    y = xt @ w.T + b                         # nn.Linear(D, D)
    return jnp.swapaxes(y, 1, 2)             # 'b n d -> b d n'


if __name__ == "__main__":
    # Small config consistent with FCSpatial: x is [batch, dim, seq] with fc = Linear(dim, dim).
    B, D, N = 8, 32, 64

    key = jax.random.PRNGKey(0)
    kx, kw, kb = jax.random.split(key, 3)
    x = jax.random.normal(kx, (B, D, N), jnp.float32)

    # nn.Linear default init: uniform(-1/sqrt(fan_in), 1/sqrt(fan_in))
    lim = 1.0 / np.sqrt(D)
    w = jax.random.uniform(kw, (D, D), jnp.float32, -lim, lim)   # [out_features, in_features]
    b = jax.random.uniform(kb, (D,), jnp.float32, -lim, lim)

    out = fc_spatial_forward(x, w, b)
    out = jax.block_until_ready(out)

    ref = reference_forward(x, w, b)
    assert out.shape == (B, D, N), out.shape
    np.testing.assert_allclose(np.asarray(out), np.asarray(ref), rtol=1e-5, atol=1e-5)

    print("KERNEL_OK")
</pallas_src>

<mosaic_0001>
module attributes {stable_mosaic.version = 11 : i64} {
  func.func @fc_spatial_kernel(%arg0: i32, %arg1: memref<4x32x64xf32, #tpu.memory_space<vmem>>, %arg2: memref<32x32xf32, #tpu.memory_space<vmem>>, %arg3: memref<1x32xf32, #tpu.memory_space<vmem>>, %arg4: memref<4x32x64xf32, #tpu.memory_space<vmem>>) attributes {dimension_semantics = [#tpu.dimension_semantics<parallel>], iteration_bounds = array<i64: 2>, scalar_prefetch = 0 : i64, scratch_operands = 0 : i64, tpu.core_type = #tpu.core_type<tc>, window_params = [{transform_indices = @transform_0, window_bounds = array<i64: 4, 32, 64>}, {pipeline_mode = #tpu.pipeline_mode<synchronous>, transform_indices = @transform_1, window_bounds = array<i64: 32, 32>}, {pipeline_mode = #tpu.pipeline_mode<synchronous>, transform_indices = @transform_2, window_bounds = array<i64: 1, 32>}, {transform_indices = @transform_3, window_bounds = array<i64: 4, 32, 64>}]} {
    %c0 = arith.constant 0 : index
    %c0_0 = arith.constant 0 : index
    %c0_1 = arith.constant 0 : index
    %0 = vector.load %arg1[%c0, %c0_0, %c0_1] : memref<4x32x64xf32, #tpu.memory_space<vmem>>, vector<4x32x64xf32>
    %1 = tpu.transpose %0, [0, 2, 1] : vector<4x32x64xf32> -> vector<4x64x32xf32>
    %2 = vector.shape_cast %1 : vector<4x64x32xf32> to vector<256x32xf32>
    %c0_2 = arith.constant 0 : index
    %c0_3 = arith.constant 0 : index
    %3 = vector.load %arg2[%c0_2, %c0_3] : memref<32x32xf32, #tpu.memory_space<vmem>>, vector<32x32xf32>
    %cst = arith.constant dense<0.000000e+00> : vector<256x32xf32>
    %4 = tpu.matmul %2, %3, %cst {dimension_numbers = #tpu.dot_dimension_numbers<[1], [0], [0], [1], [0, 0, 1, 1], [], []>} : vector<256x32xf32>, vector<32x32xf32>, vector<256x32xf32> -> vector<256x32xf32>
    %c0_4 = arith.constant 0 : index
    %c0_5 = arith.constant 0 : index
    %5 = vector.load %arg3[%c0_4, %c0_5] : memref<1x32xf32, #tpu.memory_space<vmem>>, vector<1x32xf32>
    %6 = vector.broadcast %5 : vector<1x32xf32> to vector<256x32xf32>
    %7 = arith.addf %4, %6 : vector<256x32xf32>
    %8 = vector.shape_cast %7 : vector<256x32xf32> to vector<4x64x32xf32>
    %9 = tpu.transpose %8, [0, 2, 1] : vector<4x64x32xf32> -> vector<4x32x64xf32>
    %c0_6 = arith.constant 0 : index
    %c0_7 = arith.constant 0 : index
    %c0_8 = arith.constant 0 : index
    %10 = vector.load %arg4[%c0_6, %c0_7, %c0_8] : memref<4x32x64xf32, #tpu.memory_space<vmem>>, vector<4x32x64xf32>
    tpu.vector_store %arg4[%c0_6, %c0_7, %c0_8], %9 {strides = array<i32>} : memref<4x32x64xf32, #tpu.memory_space<vmem>>, vector<4x32x64xf32>,
    return
  }
  func.func @transform_0(%arg0: i32) -> (i32, i32, i32) {
    %c0_i32 = arith.constant 0 : i32
    %c0_i32_0 = arith.constant 0 : i32
    %c0_i32_1 = arith.constant 0 : i32
    return %arg0, %c0_i32, %c0_i32_0 : i32, i32, i32
  }
  func.func @transform_1(%arg0: i32) -> (i32, i32) {
    %c0_i32 = arith.constant 0 : i32
    %c0_i32_0 = arith.constant 0 : i32
    %c0_i32_1 = arith.constant 0 : i32
    return %c0_i32, %c0_i32_0 : i32, i32
  }
  func.func @transform_2(%arg0: i32) -> (i32, i32) {
    %c0_i32 = arith.constant 0 : i32
    %c0_i32_0 = arith.constant 0 : i32
    %c0_i32_1 = arith.constant 0 : i32
    return %c0_i32, %c0_i32_0 : i32, i32
  }
  func.func @transform_3(%arg0: i32) -> (i32, i32, i32) {
    %c0_i32 = arith.constant 0 : i32
    %c0_i32_0 = arith.constant 0 : i32
    %c0_i32_1 = arith.constant 0 : i32
    return %arg0, %c0_i32, %c0_i32_0 : i32, i32, i32
  }
}

</mosaic_0001>

<bundles_post_ra>
// kernel: tpu_custom_call.1
= control target key start
LH: loop header
LB: loop body
LE: loop exit
PB: predicated region body
PF: predicated region fallthrough
CT: control target
= control target key end

     0   :  { %8 = vsyncpa [#allocation3], 0  ;;  %s1638_s0 = inlined_call_operand.hbm [shape: f32[8,32,64], index: 0, kind: input, shape index: {}]   ;;  %s1639_s1 = inlined_call_operand.hbm [shape: f32[32,32], index: 1, kind: input, shape index: {}]   ;;  %s1640_s2 = inlined_call_operand.vmem [shape: f32[1,32], index: 2, kind: input, shape index: {}]   ;;  %s1641_s3 = inlined_call_operand.hbm [shape: f32[8,32,64], index: 3, kind: output, shape index: {}]  }
   0x1   :  { %10 = vsyncpa [#allocation3 + $0x1], 0 }
   0x2   :  { %11 = vsyncpa [#allocation6], 0 }
   0x3   :  { %12 = vsyncpa [#allocation4], 0 }
   0x4   :  { %14 = vsyncpa [#allocation4 + $0x1], 0  ;;  %s1305_s12 = smov 0   ;;  %s1307_s13 = smov 0  }
   0x5   :  { %s1309_s14 = smov 0   ;;  %s1311_s15 = smov 0  }
   0x6 LB: > { %s1326_s16 = sadd.s32 4294967295, %s1276_s15   ;;  %s927_s17 = sadd.s32 4294967294, %s1276_s15   ;;  %s1276_s15 = sphi %s1311_s15, %s1661_s15   ;;  %s1272_s14 = sphi %s1309_s14, %s1660_s14   ;;  %s1268_s13 = sphi %s1307_s13, %s1659_s13   ;;  %s1264_s12 = sphi %s1305_s12, %s1658_s12  }
   0x7   : > { %p40_p0 = scmp.ne.s32.totalorder %s1268_s13, %s1264_s12  ;;  %p1642_p1 = scmp.eq.s32.totalorder %s1326_s16, 0 }
   0x8   : > { %p112_p3 = scmp.eq.s32.totalorder %s927_s17, 1  ;;  %p928_p5 = scmp.ge.s32.totalorder %s1276_s15, 1 }
   0x9   : > { %p1335_p4 = por %p1642_p1, %p40_p0  ;;  %p119_p7 = scmp.lt.s32.totalorder %s1276_s15, 3 }
   0xa   : > { %p1340_p6 = por %p112_p3, %p40_p0  ;;  %s1278_s21 = smov [#allocation5]  }
   0xb   : > { %s1645_s18 = scalar_select %p1335_p4, 1, 0 }
   0xc   : > { %s1646_s19 = scalar_select %p1340_p6, 1, 0 }
   0xd   : > { %p1345_p8 = pnand %p928_p5, %p119_p7  ;;  %s131_s22 = sshll.u32 %s1278_s21, 4  ;;  %s1349_s22 = int_to_ptr.vmem [resolvable:$true] %s131_s22 }
   0xe   : > { %s1361_s24 = sadd.s32 1, %s1276_s15   ;;  %s27_s25 = sadd.s32 1, %s1272_s14 }
   0xf   : > { %s1647_s20 = scalar_select %p1345_p8, 1, 0 }
  0x10   : > { %p1094_p9 = pneg %p1345_p8  ;;  %s24_s26 = ssub.s32 %s1276_s15, %s1361_s24 }
  0x11   : > { %s1148_s29 = scalar_lea.hbm %s1639_s1, 512 }
  0x12   : > { %p1356_p11 = pnand %p1094_p9, %p1642_p1  ;;  %p1149_p12 = scmp.ne.s32.totalorder %s1639_s1, %s1148_s29 }
  0x13   : > { %p1155_p5 = scmp.lt.u32.totalorder %s1148_s29, %s1639_s1 }
  0x14   : > { %p1150_p13 = pneg %p1356_p11 }
  0x16   : > { %p1151_p0 = pnand %p1150_p13, %p1149_p12 }
  0x18   : > { %p1152_p3 = pneg %p1151_p0 }
  0x1a   : > { %p1157_p7 = pnand %p1155_p5, %p1152_p3 }
  0x1c   : > { %1160 = shalt.err (!%p1157_p7)
}
  0x1d   : > { %s1161_s7 = scalar_lea.vmem %s1349_s22, 512  ;;  %p1169_p2 = scmp.lt.s32.totalorder %s1349_s22, %s1349_s22 }
  0x1e   : > { %p1162_p9 = scmp.ne.s32.totalorder %s1349_s22, %s1161_s7  ;;  %p1170_p6 = scmp.lt.s32.totalorder %s1161_s7, %s1161_s7 }
  0x20   : > { %p1164_p10 = pnand %p1162_p9, %p1150_p13  ;;  %p1171_p4 = por %p1170_p6, %p1169_p2 }
  0x22   : > { %p1165_p1 = pneg %p1164_p10 }
  0x24   : > { %p1172_p8 = pnand %p1171_p4, %p1165_p1 }
  0x26   : > { %1175 = shalt.err (!%p1172_p8)
}
  0x27   : > { %s1279_s8 = smov 128   ;;  %s1280_s9 = smov 8  }
  0x28   : > { %1097 = dma.hbm_to_vmem [thread:$0]  (!%p1356_p11), %s1639_s1, 512, %s1349_s22, [#allocation6], %s1279_s8, %s1279_s8, %s1280_s9  }
  0x29   : > { %p25_p1 = scmp.eq.s32.totalorder %s24_s26, 0  ;;  %p34_p2 = scmp.ne.s32.totalorder %s1272_s14, %s1268_s13 }
  0x2a   : > { %p35_p4 = scmp.eq.s32.totalorder %s1276_s15, 0  ;;  %p1107_p6 = scmp.lt.s32.totalorder %s1276_s15, 2 }
  0x2b   : > { %s1395_s17 = scalar_select %p25_p1, %s1272_s14, %s27_s25  }
  0x2c   : > { %p36_p8 = por %p35_p4, %p34_p2  ;;  %p1649_p10 = scmp.eq.s32.totalorder %s1326_s16, 1 }
  0x2d   : > { %s148_s23 = sand.u32 1, %s1272_s14   ;;  %s979_s27 = sshll.u32 %s1276_s15, 11 }
  0x2e   : > { %p1399_p12 = por %p1649_p10, %p34_p2  ;;  %s931_s28 = sshll.u32 %s148_s23, 7 }
  0x2f   : > { %s1408_s4 = scalar_lea.hbm %s1638_s0, %s979_s27  ;;  %s152_s22 = scalar_lea.vmem [#allocation2], %s931_s28 }
  0x30   : > { %s160_s25 = sshll.u32 %s152_s22, 4  ;;  %p1410_p11 = pnand %p1107_p6, %p36_p8  ;;  %s1414_s25 = int_to_ptr.vmem [resolvable:$true] %s160_s25 }
  0x31   : > { %s1416_s5 = scalar_lea.sflag [#allocation3], %s148_s23  ;;  %s1176_s6 = scalar_lea.hbm %s1408_s4, 2048 }
  0x32   : > { %p1177_p13 = scmp.ne.s32.totalorder %s1408_s4, %s1176_s6  ;;  %p1178_p0 = pneg %p1410_p11 }
  0x33   : > { %s1181_s11 = scalar_lea.hbm %s1638_s0, 4096  ;;  %p1182_p7 = scmp.lt.u32.totalorder %s1408_s4, %s1638_s0 }
  0x34   : > { %p1179_p3 = pnand %p1178_p0, %p1177_p13  ;;  %p1183_p9 = scmp.lt.u32.totalorder %s1181_s11, %s1176_s6 }
  0x35   : > { %p1185_p2 = scmp.lt.u32.totalorder %s1176_s6, %s1408_s4 }
  0x36   : > { %p1180_p5 = pneg %p1179_p3  ;;  %p1184_p1 = por %p1183_p9, %p1182_p7 }
  0x38   : > { %p1186_p4 = por %p1185_p2, %p1184_p1 }
  0x3a   : > { %p1187_p6 = pnand %p1186_p4, %p1180_p5 }
  0x3c   : > { %1190 = shalt.err (!%p1187_p6)
}
  0x3d   : > { %s1191_s23 = scalar_lea.vmem %s1414_s25, 2048  ;;  %s1281_s29 = smov [#allocation2]  }
  0x3e   : > { %p1192_p8 = scmp.ne.s32.totalorder %s1414_s25, %s1191_s23  ;;  %s1196_s30 = sshll.u32 %s1281_s29, 4  ;;  %s1197_s30 = int_to_ptr.vmem [resolvable:$false] %s1196_s30 }
  0x3f   : > { %s1198_s22 = scalar_lea.vmem %s1197_s30, 4096  ;;  %p1199_p3 = scmp.lt.s32.totalorder %s1414_s25, %s1197_s30 }
  0x40   : > { %p1194_p10 = pnand %p1192_p8, %p1178_p0  ;;  %p1200_p7 = scmp.lt.s32.totalorder %s1198_s22, %s1191_s23 }
  0x42   : > { %p1195_p13 = pneg %p1194_p10  ;;  %p1201_p9 = por %p1200_p7, %p1199_p3 }
  0x44   : > { %p1202_p1 = pnand %p1201_p9, %p1195_p13 }
  0x46   : > { %1205 = shalt.err (!%p1202_p1)
}
  0x47   : > { %1101 = dma.hbm_to_vmem [thread:$0]  (!%p1410_p11), %s1408_s4, 2048, %s1414_s25, %s1416_s5, %s1279_s8, %s1279_s8, %s1280_s9  }
  0x48   : > { %p1652_p0 = scmp.ne.s32.totalorder %s1647_s20, 0 }
  0x49   : > { %s1450_s6 = sand.u32 (!%p1652_p0), 1, %s1268_s13   ;;  %p1653_p5 = scmp.ne.s32.totalorder (!%p1652_p0), %s1645_s18, 0 }
  0x4a   : > { %172 = sbr.rel (%p1652_p0) target bundleno = 654 (0x28e), region = 32  ;;  %s936_s7 = sshll.u32 (!%p1652_p0), %s1450_s6, 7 }
  0x4b   : > { %s175_s10 = scalar_lea.sflag (!%p1652_p0), [#allocation3], %s1450_s6  ;;  %s1456_s26 = scalar_lea.vmem (!%p1652_p0), [#allocation2], %s936_s7 }
  0x51   : > { %1251 = dma.done.wait (%p1653_p5), %s175_s10, 2048  }
  0x52   : > { %1253 = vsyncadd (%p1653_p5), %s175_s10, 4294965248  ;;  %p1654_p11 = scmp.eq.s32.totalorder %s1326_s16, 0 }
  0x54   : > { %1255 = dma.done.wait (%p1654_p11), [#allocation6], 512   ;;  %p1655_p2 = pmov %p1654_p11 }
  0x55   : > { %v207_v0 = vld [vmem:[%s1456_s26] sm:$0xff]  ;;  %v208_v2 = vld [vmem:[%s1456_s26 + $0x8] sm:$0xff]  ;;  %v209_v6 = vld [vmem:[%s1456_s26 + $0x10] sm:$0xff]  ;;  %vm362_vm0 = vcmask 261120   ;;  %vm812_vm1 = vcmask 523264   ;;  %s1553_s8 = scalar_lea.vmem [#allocation7], %s936_s7 }
  0x56   : > { %1257 = vsyncadd (%p1655_p2), [#allocation6], 4294966784  ;;  %223 = vxpose.xlu0.b32.start [1/4] (short) (narrow) %v207_v0, 64  ;;  %v215_v1 = vld [vmem:[%s1456_s26 + $0x40] sm:$0xff]  ;;  %v216_v3 = vld [vmem:[%s1456_s26 + $0x48] sm:$0xff]  ;;  %s981_s9 = sshll.u32 %s1326_s16, 11 }
  0x57   : > { %287 = vxpose.xlu1.b32.start [1/4] (short) (narrow) %v215_v1, 64  ;;  %v351_v4 = vld [vmem:[#allocation5] sm:$0xff]  ;;  %v352_v5 = vld [vmem:[#allocation5 + $0x8] sm:$0xff]  ;;  %v353_v8 = vld [vmem:[#allocation5 + $0x10] sm:$0xff]  ;;  %s844_s4 = sshll.u32 %s1553_s8, 4  ;;  %s1590_s11 = scalar_lea.hbm %s1641_s3, %s981_s9  ;;  %s1592_s4 = int_to_ptr.vmem [resolvable:$true] %s844_s4 }
  0x58   : > { %v1074_v7 = vpack.c.bf16 %v352_v5, %v351_v4  ;;  %v354_v9 = vld [vmem:[#allocation5 + $0x18] sm:$0xff]  ;;  %v217_v10 = vld [vmem:[%s1456_s26 + $0x50] sm:$0xff]  ;;  %v211_v14 = vld [vmem:[%s1456_s26 + $0x20] sm:$0xff]  ;;  %s830_s27 = scalar_lea.sflag [#allocation4], %s1450_s6  ;;  %s1206_s28 = scalar_lea.vmem %s1592_s4, 2048 }
  0x59   : > { %v1078_v11 = vpack.c.bf16 %v354_v9, %v353_v8  ;;  %v210_v12 = vld [vmem:[%s1456_s26 + $0x18] sm:$0xff]  ;;  %v219_v15 = vld [vmem:[%s1456_s26 + $0x60] sm:$0xff]  ;;  %v212_v16 = vld [vmem:[%s1456_s26 + $0x28] sm:$0xff]  ;;  %p1207_p4 = scmp.ne.s32.totalorder %s1592_s4, %s1206_s28  ;;  %s1282_s16 = smov [#allocation7]  }
  0x5a   : > { %224 = vxpose.xlu0.b32.cont [2/4] (short) (narrow) %v208_v2, 64  ;;  %1075 = vmatprep.subr.bf16.mxu0 %v1074_v7  ;;  %v218_v13 = vld [vmem:[%s1456_s26 + $0x58] sm:$0xff]  ;;  %v220_v17 = vld [vmem:[%s1456_s26 + $0x68] sm:$0xff]  ;;  %v213_v18 = vld [vmem:[%s1456_s26 + $0x30] sm:$0xff]  ;;  %s1210_s23 = sshll.u32 %s1282_s16, 4  ;;  %s1211_s23 = int_to_ptr.vmem [resolvable:$false] %s1210_s23 }
  0x5b   : > { %288 = vxpose.xlu1.b32.cont [2/4] (short) (narrow) %v216_v3, 64  ;;  %1082 = vmatprep.subr.bf16.mxu1 %v1074_v7  ;;  %v221_v19 = vld [vmem:[%s1456_s26 + $0x70] sm:$0xff]  ;;  %v214_v20 = vld [vmem:[%s1456_s26 + $0x38] sm:$0xff]  ;;  %v1517_v54 = vld [vmem:[%s1640_s2] ss:$0 sm:$0xff]  ;;  %p1208_p6 = pnand %p1207_p4, %p1399_p12  ;;  %s1212_s29 = scalar_lea.vmem %s1211_s23, 4096 }
  0x5c   : > { %1077 = vmatpush3.bf16.msra.mxu0 %v1074_v7  ;;  %1084 = vmatpush3.bf16.msra.mxu1 %v1074_v7  ;;  %v222_v21 = vld [vmem:[%s1456_s26 + $0x78] sm:$0xff]  ;;  %p1213_p10 = scmp.lt.s32.totalorder %s1592_s4, %s1211_s23  ;;  %p1214_p13 = scmp.lt.s32.totalorder %s1212_s29, %s1206_s28 }
  0x5d   : > { %1079 = vmatprep.subr.bf16.mxu0 %v1078_v11  ;;  %1083 = vmatprep.subr.bf16.mxu1 %v1078_v11  ;;  %p1209_p8 = pneg %p1208_p6 }
  0x5e   : > { %225 = vxpose.xlu0.b32.cont [3/4] (short) (narrow) %v209_v6, 64  ;;  %p1215_p3 = por %p1214_p13, %p1213_p10 }
  0x5f   : > { %289 = vxpose.xlu1.b32.cont [3/4] (short) (narrow) %v217_v10, 64 }
  0x60   : > { %1081 = vmatpush3.bf16.msra.mxu0 %v1078_v11  ;;  %1085 = vmatpush3.bf16.msra.mxu1 %v1078_v11  ;;  %p1216_p7 = pnand %p1215_p3, %p1209_p8 }
  0x62   : > { %226 = vxpose.xlu0.b32.end [4/4] (short) (narrow) %v210_v12, 64 }
  0x63   : > { %290 = vxpose.xlu1.b32.end [4/4] (short) (narrow) %v218_v13, 64 }
  0x73   : > { %255 = vxpose.xlu0.b32.start [1/4] (short) (narrow) %v211_v14, 64 }
  0x74   : > { %319 = vxpose.xlu1.b32.start [1/4] (short) (narrow) %v219_v15, 64 }
  0x77   : > { %256 = vxpose.xlu0.b32.cont [2/4] (short) (narrow) %v212_v16, 64 }
  0x78   : > { %320 = vxpose.xlu1.b32.cont [2/4] (short) (narrow) %v220_v17, 64 }
  0x7b   : > { %257 = vxpose.xlu0.b32.cont [3/4] (short) (narrow) %v213_v18, 64 }
  0x7c   : > { %321 = vxpose.xlu1.b32.cont [3/4] (short) (narrow) %v221_v19, 64 }
  0x7f   : > { %258 = vxpose.xlu0.b32.end [4/4] (short) (narrow) %v214_v20, 64 }
  0x80   : > { %322 = vxpose.xlu1.b32.end [4/4] (short) (narrow) %v222_v21, 64 }
  0xd6   : > { %v239_v22 = vpop.trf.xlu0 }
  0xd7   : > { %1026 = vmatprep.mubr.msk.f32.mxu0 %vm362_vm0, %v239_v22  ;;  %v303_v23 = vpop.trf.xlu1 }
  0xd8   : > { %1050 = vmatprep.mubr.msk.f32.mxu1 %vm362_vm0, %v303_v23 }
  0xda   : > { %v240_v24 = vpop.trf.xlu0 }
  0xdb   : > { %1027 = vmatmul.mubr.msk.f32.vlgmr.msra.gmra.mrb[0].mxu0 %vm362_vm0, %v240_v24  ;;  %v304_v25 = vpop.trf.xlu1 }
  0xdc   : > { %1051 = vmatmul.mubr.msk.f32.vlgmr.msra.gmra.mrb[0].mxu1 %vm362_vm0, %v304_v25 }
  0xde   : > { %v241_v26 = vpop.trf.xlu0 }
  0xdf   : > { %1029 = vmatprep.mubr.msk.f32.mxu0 %vm362_vm0, %v241_v26  ;;  %v305_v27 = vpop.trf.xlu1 }
  0xe0   : > { %1053 = vmatprep.mubr.msk.f32.mxu1 %vm362_vm0, %v305_v27 }
  0xe2   : > { %v242_v28 = vpop.trf.xlu0 }
  0xe3   : > { %1030 = vmatmul.mubr.msk.f32.gmra.mrb[2].mxu0 %vm362_vm0, %v242_v28  ;;  %v306_v29 = vpop.trf.xlu1 }
  0xe4   : > { %1054 = vmatmul.mubr.msk.f32.gmra.mrb[2].mxu1 %vm362_vm0, %v306_v29 }
  0xe6   : > { %v243_v30 = vpop.trf.xlu0 }
  0xe7   : > { %1032 = vmatprep.mubr.msk.f32.mxu0 %vm362_vm0, %v243_v30  ;;  %v307_v31 = vpop.trf.xlu1 }
  0xe8   : > { %1056 = vmatprep.mubr.msk.f32.mxu1 %vm362_vm0, %v307_v31 }
  0xea   : > { %v244_v32 = vpop.trf.xlu0 }
  0xeb   : > { %1033 = vmatmul.mubr.msk.f32.gmra.mrb[4].mxu0 %vm362_vm0, %v244_v32  ;;  %v308_v33 = vpop.trf.xlu1 }
  0xec   : > { %1057 = vmatmul.mubr.msk.f32.gmra.mrb[4].mxu1 %vm362_vm0, %v308_v33 }
  0xee   : > { %v245_v34 = vpop.trf.xlu0 }
  0xef   : > { %1035 = vmatprep.mubr.msk.f32.mxu0 %vm362_vm0, %v245_v34  ;;  %v309_v35 = vpop.trf.xlu1 }
  0xf0   : > { %1059 = vmatprep.mubr.msk.f32.mxu1 %vm362_vm0, %v309_v35 }
  0xf2   : > { %v246_v36 = vpop.trf.xlu0 }
  0xf3   : > { %1036 = vmatmul.mubr.msk.f32.gmra.mrb[6].mxu0 %vm362_vm0, %v246_v36  ;;  %v310_v37 = vpop.trf.xlu1 }
  0xf4   : > { %1060 = vmatmul.mubr.msk.f32.gmra.mrb[6].mxu1 %vm362_vm0, %v310_v37 }
  0xf6   : > { %v271_v38 = vpop.trf.xlu0 }
  0xf7   : > { %1038 = vmatprep.mubr.msk.f32.mxu0 %vm362_vm0, %v271_v38  ;;  %v335_v39 = vpop.trf.xlu1 }
  0xf8   : > { %1062 = vmatprep.mubr.msk.f32.mxu1 %vm362_vm0, %v335_v39 }
  0xfa   : > { %v272_v40 = vpop.trf.xlu0 }
  0xfb   : > { %1039 = vmatmul.mubr.msk.f32.gmra.mrb[8].mxu0 %vm362_vm0, %v272_v40  ;;  %v336_v41 = vpop.trf.xlu1 }
  0xfc   : > { %1063 = vmatmul.mubr.msk.f32.gmra.mrb[8].mxu1 %vm362_vm0, %v336_v41 }
  0xfe   : > { %v273_v42 = vpop.trf.xlu0 }
  0xff   : > { %1041 = vmatprep.mubr.msk.f32.mxu0 %vm362_vm0, %v273_v42  ;;  %v337_v43 = vpop.trf.xlu1 }
 0x100   : > { %1065 = vmatprep.mubr.msk.f32.mxu1 %vm362_vm0, %v337_v43 }
 0x102   : > { %v274_v44 = vpop.trf.xlu0 }
 0x103   : > { %1042 = vmatmul.mubr.msk.f32.gmra.mrb[10].mxu0 %vm362_vm0, %v274_v44  ;;  %v338_v45 = vpop.trf.xlu1 }
 0x104   : > { %1066 = vmatmul.mubr.msk.f32.gmra.mrb[10].mxu1 %vm362_vm0, %v338_v45 }
 0x106   : > { %v275_v46 = vpop.trf.xlu0 }
 0x107   : > { %1044 = vmatprep.mubr.msk.f32.mxu0 %vm362_vm0, %v275_v46  ;;  %v339_v47 = vpop.trf.xlu1 }
 0x108   : > { %1068 = vmatprep.mubr.msk.f32.mxu1 %vm362_vm0, %v339_v47 }
 0x10a   : > { %v276_v48 = vpop.trf.xlu0 }
 0x10b   : > { %1045 = vmatmul.mubr.msk.f32.gmra.mrb[12].mxu0 %vm362_vm0, %v276_v48  ;;  %v340_v49 = vpop.trf.xlu1 }
 0x10c   : > { %1069 = vmatmul.mubr.msk.f32.gmra.mrb[12].mxu1 %vm362_vm0, %v340_v49 }
 0x10e   : > { %v277_v50 = vpop.trf.xlu0 }
 0x10f   : > { %1047 = vmatprep.mubr.msk.f32.mxu0 %vm362_vm0, %v277_v50  ;;  %v341_v51 = vpop.trf.xlu1 }
 0x110   : > { %1071 = vmatprep.mubr.msk.f32.mxu1 %vm362_vm0, %v341_v51 }
 0x112   : > { %v278_v52 = vpop.trf.xlu0 }
 0x113   : > { %1048 = vmatmul.mubr.msk.f32.gmra.mrb[14].mxu0 %vm362_vm0, %v278_v52  ;;  %v342_v53 = vpop.trf.xlu1 }
 0x114   : > { %1072 = vmatmul.mubr.msk.f32.gmra.mrb[14].mxu1 %vm362_vm0, %v342_v53 }
 0x1ae   : > { %v1028_v55 = vpop.f32.mrb[0].mxu0 }
 0x1af   : > { %v525_v56 = vpop.f32.mrb[1].mxu0  ;;  %v1052_v57 = vpop.f32.mrb[0].mxu1  ;;  %v531_v60 = vadd.f32 %v1028_v55, %v1517_v54 }
 0x1b0   : > { %v526_v58 = vadd.f32 %v1517_v54, %v525_v56  ;;  %v605_v59 = vpop.f32.mrb[1].mxu1  ;;  %v611_v23 = vadd.f32 %v1052_v57, %v1517_v54 }
 0x1b1   : > { %v606_v15 = vadd.f32 %v1517_v54, %v605_v59 }
 0x1b2   : > { %684 = vxpose.xlu0.b32.start [1/8] (short) (narrow) %v526_v58, 32 }
 0x1b6   : > { %685 = vxpose.xlu0.b32.cont [2/8] (short) (narrow) %v531_v60, 32  ;;  %v1031_v61 = vpop.f32.mrb[2].mxu0 }
 0x1b7   : > { %v535_v62 = vpop.f32.mrb[3].mxu0  ;;  %v1055_v63 = vpop.f32.mrb[2].mxu1  ;;  %v541_v2 = vadd.f32 %v1031_v61, %v1517_v54 }
 0x1b8   : > { %v536_v0 = vadd.f32 %v1517_v54, %v535_v62  ;;  %v615_v1 = vpop.f32.mrb[3].mxu1  ;;  %v621_v33 = vadd.f32 %v1055_v63, %v1517_v54 }
 0x1b9   : > { %v616_v25 = vadd.f32 %v1517_v54, %v615_v1 }
 0x1ba   : > { %686 = vxpose.xlu0.b32.cont [3/8] (short) (narrow) %v536_v0, 32 }
 0x1be   : > { %687 = vxpose.xlu0.b32.cont [4/8] (short) (narrow) %v541_v2, 32  ;;  %v1034_v3 = vpop.f32.mrb[4].mxu0 }
 0x1bf   : > { %v545_v4 = vpop.f32.mrb[5].mxu0  ;;  %v1058_v5 = vpop.f32.mrb[4].mxu1  ;;  %v551_v8 = vadd.f32 %v1034_v3, %v1517_v54 }
 0x1c0   : > { %v546_v6 = vadd.f32 %v1517_v54, %v545_v4  ;;  %v625_v7 = vpop.f32.mrb[5].mxu1  ;;  %v631_v43 = vadd.f32 %v1058_v5, %v1517_v54 }
 0x1c1   : > { %v626_v35 = vadd.f32 %v1517_v54, %v625_v7 }
 0x1c2   : > { %688 = vxpose.xlu0.b32.cont [5/8] (short) (narrow) %v546_v6, 32 }
 0x1c6   : > { %689 = vxpose.xlu0.b32.cont [6/8] (short) (narrow) %v551_v8, 32  ;;  %v1037_v9 = vpop.f32.mrb[6].mxu0 }
 0x1c7   : > { %v555_v10 = vpop.f32.mrb[7].mxu0  ;;  %v1061_v11 = vpop.f32.mrb[6].mxu1  ;;  %v561_v14 = vadd.f32 %v1037_v9, %v1517_v54 }
 0x1c8   : > { %v556_v12 = vadd.f32 %v1517_v54, %v555_v10  ;;  %v635_v13 = vpop.f32.mrb[7].mxu1  ;;  %v641_v53 = vadd.f32 %v1061_v11, %v1517_v54 }
 0x1c9   : > { %v636_v45 = vadd.f32 %v1517_v54, %v635_v13 }
 0x1ca   : > { %690 = vxpose.xlu0.b32.cont [7/8] (short) (narrow) %v556_v12, 32 }
 0x1ce   : > { %691 = vxpose.xlu0.b32.end [8/8] (short) (narrow) %v561_v14, 32  ;;  %v1040_v16 = vpop.f32.mrb[8].mxu0 }
 0x1cf   : > { %v565_v17 = vpop.f32.mrb[9].mxu0  ;;  %v1064_v18 = vpop.f32.mrb[8].mxu1  ;;  %v571_v24 = vadd.f32 %v1040_v16, %v1517_v54 }
 0x1d0   : > { %v566_v19 = vadd.f32 %v1517_v54, %v565_v17  ;;  %v651_v20 = vadd.f32 %v1064_v18, %v1517_v54  ;;  %v645_v21 = vpop.f32.mrb[9].mxu1 }
 0x1d1   : > { %v646_v22 = vadd.f32 %v1517_v54, %v645_v21 }
 0x1d2   : > { %748 = vxpose.xlu0.b32.start [1/8] (short) (narrow) %v606_v15, 32  ;;  %716 = vxpose.xlu1.b32.start [1/8] (short) (narrow) %v566_v19, 32 }
 0x1d6   : > { %749 = vxpose.xlu0.b32.cont [2/8] (short) (narrow) %v611_v23, 32  ;;  %717 = vxpose.xlu1.b32.cont [2/8] (short) (narrow) %v571_v24, 32  ;;  %v1043_v26 = vpop.f32.mrb[10].mxu0 }
 0x1d7   : > { %v575_v27 = vpop.f32.mrb[11].mxu0  ;;  %v1067_v28 = vpop.f32.mrb[10].mxu1  ;;  %v581_v34 = vadd.f32 %v1043_v26, %v1517_v54 }
 0x1d8   : > { %v576_v29 = vadd.f32 %v1517_v54, %v575_v27  ;;  %v661_v30 = vadd.f32 %v1067_v28, %v1517_v54  ;;  %v655_v31 = vpop.f32.mrb[11].mxu1 }
 0x1d9   : > { %v656_v32 = vadd.f32 %v1517_v54, %v655_v31 }
 0x1da   : > { %750 = vxpose.xlu0.b32.cont [3/8] (short) (narrow) %v616_v25, 32  ;;  %718 = vxpose.xlu1.b32.cont [3/8] (short) (narrow) %v576_v29, 32 }
 0x1de   : > { %751 = vxpose.xlu0.b32.cont [4/8] (short) (narrow) %v621_v33, 32  ;;  %719 = vxpose.xlu1.b32.cont [4/8] (short) (narrow) %v581_v34, 32  ;;  %v1046_v36 = vpop.f32.mrb[12].mxu0 }
 0x1df   : > { %v585_v37 = vpop.f32.mrb[13].mxu0  ;;  %v1070_v38 = vpop.f32.mrb[12].mxu1  ;;  %v591_v44 = vadd.f32 %v1046_v36, %v1517_v54 }
 0x1e0   : > { %v586_v39 = vadd.f32 %v1517_v54, %v585_v37  ;;  %v671_v40 = vadd.f32 %v1070_v38, %v1517_v54  ;;  %v665_v41 = vpop.f32.mrb[13].mxu1 }
 0x1e1   : > { %v666_v42 = vadd.f32 %v1517_v54, %v665_v41 }
 0x1e2   : > { %752 = vxpose.xlu0.b32.cont [5/8] (short) (narrow) %v626_v35, 32  ;;  %720 = vxpose.xlu1.b32.cont [5/8] (short) (narrow) %v586_v39, 32 }
 0x1e6   : > { %753 = vxpose.xlu0.b32.cont [6/8] (short) (narrow) %v631_v43, 32  ;;  %721 = vxpose.xlu1.b32.cont [6/8] (short) (narrow) %v591_v44, 32  ;;  %v1049_v46 = vpop.f32.mrb[14].mxu0 }
 0x1e7   : > { %v595_v47 = vpop.f32.mrb[15].mxu0  ;;  %v1073_v48 = vpop.f32.mrb[14].mxu1  ;;  %v601_v55 = vadd.f32 %v1049_v46, %v1517_v54 }
 0x1e8   : > { %v596_v49 = vadd.f32 %v1517_v54, %v595_v47  ;;  %v681_v50 = vadd.f32 %v1073_v48, %v1517_v54  ;;  %v675_v51 = vpop.f32.mrb[15].mxu1 }
 0x1e9   : > { %v676_v52 = vadd.f32 %v1517_v54, %v675_v51 }
 0x1ea   : > { %754 = vxpose.xlu0.b32.cont [7/8] (short) (narrow) %v636_v45, 32  ;;  %722 = vxpose.xlu1.b32.cont [7/8] (short) (narrow) %v596_v49, 32 }
 0x1ee   : > { %755 = vxpose.xlu0.b32.end [8/8] (short) (narrow) %v641_v53, 32  ;;  %723 = vxpose.xlu1.b32.end [8/8] (short) (narrow) %v601_v55, 32 }
 0x1f2   : > { %780 = vxpose.xlu1.b32.start [1/8] (short) (narrow) %v646_v22, 32 }
 0x1f6   : > { %781 = vxpose.xlu1.b32.cont [2/8] (short) (narrow) %v651_v20, 32 }
 0x1fa   : > { %782 = vxpose.xlu1.b32.cont [3/8] (short) (narrow) %v656_v32, 32 }
 0x1fe   : > { %783 = vxpose.xlu1.b32.cont [4/8] (short) (narrow) %v661_v30, 32 }
 0x202   : > { %784 = vxpose.xlu1.b32.cont [5/8] (short) (narrow) %v666_v42, 32 }
 0x206   : > { %785 = vxpose.xlu1.b32.cont [6/8] (short) (narrow) %v671_v40, 32 }
 0x20a   : > { %786 = vxpose.xlu1.b32.cont [7/8] (short) (narrow) %v676_v52, 32 }
 0x20e   : > { %787 = vxpose.xlu1.b32.end [8/8] (short) (narrow) %v681_v50, 32 }
 0x232   : > { %v700_v56 = vpop.trf.xlu0 }
 0x233   : > { %813 = vst.msk [vmem:[%s1553_s8] sm:$0xff] %vm812_vm1, %v700_v56 }
 0x236   : > { %v701_v54 = vpop.trf.xlu0 }
 0x237   : > { %814 = vst.msk [vmem:[%s1553_s8 + $0x8] sm:$0xff] %vm812_vm1, %v701_v54 }
 0x23a   : > { %v702_v57 = vpop.trf.xlu0 }
 0x23b   : > { %815 = vst.msk [vmem:[%s1553_s8 + $0x10] sm:$0xff] %vm812_vm1, %v702_v57 }
 0x23e   : > { %v703_v58 = vpop.trf.xlu0 }
 0x23f   : > { %816 = vst.msk [vmem:[%s1553_s8 + $0x18] sm:$0xff] %vm812_vm1, %v703_v58 }
 0x252   : > { %v732_v59 = vpop.trf.xlu1  ;;  %v764_v60 = vpop.trf.xlu0 }
 0x253   : > { %817 = vst.msk [vmem:[%s1553_s8 + $0x20] sm:$0xff] %vm812_vm1, %v732_v59  ;;  %821 = vst.msk [vmem:[%s1553_s8 + $0x40] sm:$0xff] %vm812_vm1, %v764_v60 }
 0x256   : > { %v733_v61 = vpop.trf.xlu1  ;;  %v765_v62 = vpop.trf.xlu0 }
 0x257   : > { %818 = vst.msk [vmem:[%s1553_s8 + $0x28] sm:$0xff] %vm812_vm1, %v733_v61  ;;  %822 = vst.msk [vmem:[%s1553_s8 + $0x48] sm:$0xff] %vm812_vm1, %v765_v62 }
 0x25a   : > { %v734_v63 = vpop.trf.xlu1  ;;  %v766_v0 = vpop.trf.xlu0 }
 0x25b   : > { %819 = vst.msk [vmem:[%s1553_s8 + $0x30] sm:$0xff] %vm812_vm1, %v734_v63  ;;  %823 = vst.msk [vmem:[%s1553_s8 + $0x50] sm:$0xff] %vm812_vm1, %v766_v0 }
 0x25e   : > { %v735_v1 = vpop.trf.xlu1  ;;  %v767_v2 = vpop.trf.xlu0 }
 0x25f   : > { %820 = vst.msk [vmem:[%s1553_s8 + $0x38] sm:$0xff] %vm812_vm1, %v735_v1  ;;  %824 = vst.msk [vmem:[%s1553_s8 + $0x58] sm:$0xff] %vm812_vm1, %v767_v2 }
 0x272   : > { %v796_v3 = vpop.trf.xlu1 }
 0x273   : > { %825 = vst.msk [vmem:[%s1553_s8 + $0x60] sm:$0xff] %vm812_vm1, %v796_v3 }
 0x276   : > { %v797_v4 = vpop.trf.xlu1 }
 0x277   : > { %826 = vst.msk [vmem:[%s1553_s8 + $0x68] sm:$0xff] %vm812_vm1, %v797_v4 }
 0x27a   : > { %v798_v5 = vpop.trf.xlu1 }
 0x27b   : > { %827 = vst.msk [vmem:[%s1553_s8 + $0x70] sm:$0xff] %vm812_vm1, %v798_v5 }
 0x27e   : > { %v799_v6 = vpop.trf.xlu1 }
 0x27f   : > { %828 = vst.msk [vmem:[%s1553_s8 + $0x78] sm:$0xff] %vm812_vm1, %v799_v6 }
 0x280   : > { %1219 = shalt.err (!%p1216_p7)
}
 0x281   : > { %s1220_s30 = scalar_lea.hbm %s1590_s11, 2048  ;;  %s1224_s10 = scalar_lea.hbm %s1641_s3, 4096 }
 0x282   : > { %p1221_p9 = scmp.ne.s32.totalorder %s1590_s11, %s1220_s30  ;;  %p1225_p5 = scmp.lt.u32.totalorder %s1590_s11, %s1641_s3 }
 0x283   : > { %p1226_p11 = scmp.lt.u32.totalorder %s1224_s10, %s1220_s30  ;;  %p1228_p4 = scmp.lt.u32.totalorder %s1220_s30, %s1590_s11 }
 0x284   : > { %p1222_p1 = pnand %p1221_p9, %p1399_p12 }
 0x285   : > { %p1227_p2 = por %p1226_p11, %p1225_p5 }
 0x286   : > { %p1223_p0 = pneg %p1222_p1 }
 0x287   : > { %p1229_p6 = por %p1228_p4, %p1227_p2 }
 0x289   : > { %p1230_p8 = pnand %p1229_p6, %p1223_p0 }
 0x28b   : > { %1233 = shalt.err (!%p1230_p8)
}
 0x28c   : > { %s1283_s20 = smov 128   ;;  %s1284_s8 = smov 8  }
 0x28d   : > { %1092 = dma.vmem_to_hbm [thread:$0]  (%p1399_p12), %s1592_s4, 2048, %s1590_s11, %s830_s27, %s1283_s20, %s1283_s20, %s1284_s8  }
 0x28e PF: > { %s859_s9 = sand.u32 1, %s1264_s12   ;;  %p1656_p10 = scmp.ne.s32.totalorder %s1646_s19, 0 }
 0x28f   : > { %p1657_p13 = scmp.ge.s32.totalorder %s1276_s15, 2  ;;  %s860_s25 = scalar_lea.sflag [#allocation4], %s859_s9 }
 0x291   : > { %p1103_p3 = pnand %p1657_p13, %p1656_p10 }
 0x293   : > { %1259 = dma.done.wait (!%p1103_p3), %s860_s25, 2048  }
 0x294   : > { %1261 = vsyncadd (!%p1103_p3), %s860_s25, 4294965248  ;;  %p17_p7 = scmp.ge.s32.totalorder %s1361_s24, 4   ;;  %s1658_s12 = smov %s1268_s13 }
 0x295   : > { %s1659_s13 = smov %s1272_s14  ;;  %s1660_s14 = smov %s1395_s17 }
 0x296   : > { %s1661_s15 = smov %s1361_s24  ;;  %19 = sbr.rel (!%p17_p7) target bundleno = 6 (0x6), region = 81 }
 0x29d   :  { %865 = vsyncpa [#allocation3], 1 }
 0x29e   :  { %867 = vsyncpa [#allocation3 + $0x1], 1 }
 0x29f   :  { %868 = vsyncpa [#allocation6], 1 }
 0x2a0   :  { %869 = vsyncpa [#allocation4], 1 }
 0x2a1   :  { %871 = vsyncpa [#allocation4 + $0x1], 1 }

</bundles_post_ra>
